<compile_context>
chip_gen: v5e
topology: v5e:2x2
jax: 0.10.0
libtpu: 0.0.40
codegen_flags: <defaults>
</compile_context>

<pallas_src>
import functools

import jax
import jax.numpy as jnp
from jax.experimental import pallas as pl
from jax.experimental.pallas import tpu as pltpu


def _model_fwd_kernel(x_ref, w_ref, b_ref, o_ref, *, n_instances, n_hidden,
                      n_features):
    # x_ref: (B, I*F)   w_ref: (I, H, F)   b_ref: (1, I*F)   o_ref: (B, I*F)
    F = n_features
    for i in range(n_instances):            # tiny static unroll (I == 8)
        lo = i * F
        xi = x_ref[:, lo:lo + F]            # (B, F)  static lane slice
        wi = w_ref[i]                       # (H, F)
        bi = b_ref[:, lo:lo + F]            # (1, F)

        out_i = jnp.zeros_like(xi)          # (B, F) f32 accumulator
        for h in range(n_hidden):           # tiny static unroll (H == 2)
            w_row = wi[h:h + 1, :]          # (1, F)
            # hidden[:, h] = sum_f xi[:, f] * W[i, h, f]   (VPU mul + lane reduce)
            hid = jnp.sum(xi * w_row, axis=-1, keepdims=True)    # (B, 1)
            # out_i += hidden[:, h] * W[i, h, :]
            out_i = out_i + hid * w_row                           # (B, F)

        o_ref[:, lo:lo + F] = jnp.maximum(out_i + bi, 0.0).astype(o_ref.dtype)


@jax.jit
def model_forward(features, W, b_final):
    """features: [batch, n_inst, n_feat]; W: [n_inst, n_hid, n_feat];
    b_final: [n_inst, n_feat]. Returns [batch, n_inst, n_feat]."""
    B, I, F = features.shape
    _, H, _ = W.shape

    # Contiguous (free) reshapes only -- no transposes, no extra HBM passes.
    x_flat = features.reshape(B, I * F)      # (B, I*F)  lane-dense input
    b_flat = b_final.reshape(1, I * F)       # (1, I*F)

    kernel = functools.partial(
        _model_fwd_kernel, n_instances=I, n_hidden=H, n_features=F)

    out_flat = pl.pallas_call(
        kernel,
        out_shape=jax.ShapeDtypeStruct((B, I * F), features.dtype),
        # No grid: single invocation; every operand fully resident in VMEM.
        in_specs=[
            pl.BlockSpec(memory_space=pltpu.MemorySpace.VMEM),   # features
            pl.BlockSpec(memory_space=pltpu.MemorySpace.VMEM),   # W
            pl.BlockSpec(memory_space=pltpu.MemorySpace.VMEM),   # b_final
        ],
        out_specs=pl.BlockSpec(memory_space=pltpu.MemorySpace.VMEM),
    )(x_flat, W, b_flat)

    return out_flat.reshape(B, I, F)         # free contiguous reshape


def _reference_forward(features, W, b_final):
    hidden = jnp.einsum("bif,ihf->bih", features, W)
    out = jnp.einsum("bih,ihf->bif", hidden, W)
    return jnp.maximum(out + b_final[None, :, :], 0.0)


def _xavier_normal(key, shape, dtype=jnp.float32):
    # matches torch.nn.init.xavier_normal_ for a 3-D (inst, fan_out, fan_in) tensor
    fan_in, fan_out = shape[-1], shape[-2]
    std = (2.0 / (fan_in + fan_out)) ** 0.5
    return std * jax.random.normal(key, shape, dtype)


if __name__ == "__main__":
    # Config(n_instances=8, n_features=5, n_hidden=2) from the reference script.
    n_instances, n_features, n_hidden = 8, 5, 2
    batch = 16

    key = jax.random.PRNGKey(0)
    k_w, k_feat, k_seed = jax.random.split(key, 3)

    W = _xavier_normal(k_w, (n_instances, n_hidden, n_features))
    b_final = jnp.zeros((n_instances, n_features), jnp.float32)

    # generate_batch(batch): uniform features, kept with prob = feature_probability (=1.0 here)
    feature_probability = jnp.ones((n_instances, n_features), jnp.float32)
    feat = jax.random.uniform(k_feat, (batch, n_instances, n_features))
    seeds = jax.random.uniform(k_seed, (batch, n_instances, n_features))
    features = jnp.where(seeds <= feature_probability[None], feat, 0.0)

    out = model_forward(features, W, b_final)
    out = jax.block_until_ready(out)

    ref = _reference_forward(features, W, b_final)
    assert out.shape == (batch, n_instances, n_features)
    assert jnp.allclose(out, ref, atol=1e-5, rtol=1e-5), "mismatch vs JAX reference"

    print("KERNEL_OK")
</pallas_src>

<mosaic_0001>
module attributes {stable_mosaic.version = 11 : i64} {
  func.func @_model_fwd_kernel(%arg0: memref<16x40xf32, #tpu.memory_space<vmem>>, %arg1: memref<8x2x5xf32, #tpu.memory_space<vmem>>, %arg2: memref<1x40xf32, #tpu.memory_space<vmem>>, %arg3: memref<16x40xf32, #tpu.memory_space<vmem>>) attributes {dimension_semantics = [], scalar_prefetch = 0 : i64, scratch_operands = 0 : i64, tpu.core_type = #tpu.core_type<tc>} {
    %c0 = arith.constant 0 : index
    %c0_0 = arith.constant 0 : index
    %0 = vector.load %arg0[%c0, %c0_0] : memref<16x40xf32, #tpu.memory_space<vmem>>, vector<16x5xf32>
    %c0_1 = arith.constant 0 : index
    %c0_2 = arith.constant 0 : index
    %c0_3 = arith.constant 0 : index
    %1 = vector.load %arg1[%c0_1, %c0_2, %c0_3] : memref<8x2x5xf32, #tpu.memory_space<vmem>>, vector<1x2x5xf32>
    %2 = vector.shape_cast %1 : vector<1x2x5xf32> to vector<2x5xf32>
    %c0_4 = arith.constant 0 : index
    %c0_5 = arith.constant 0 : index
    %3 = vector.load %arg2[%c0_4, %c0_5] : memref<1x40xf32, #tpu.memory_space<vmem>>, vector<1x5xf32>
    %cst = arith.constant 0.000000e+00 : f32
    %4 = vector.broadcast %cst : f32 to vector<16x5xf32>
    %5 = vector.extract_strided_slice %2 {offsets = [0, 0], sizes = [1, 5], strides = [1, 1]} : vector<2x5xf32> to vector<1x5xf32>
    %6 = vector.broadcast %5 : vector<1x5xf32> to vector<16x5xf32>
    %7 = arith.mulf %0, %6 : vector<16x5xf32>
    %cst_6 = arith.constant dense<0.000000e+00> : vector<16xf32>
    %8 = vector.multi_reduction <add>, %7, %cst_6 [1] : vector<16x5xf32> to vector<16xf32>
    %9 = vector.shape_cast %8 : vector<16xf32> to vector<16x1xf32>
    %10 = vector.broadcast %9 : vector<16x1xf32> to vector<16x5xf32>
    %11 = vector.broadcast %5 : vector<1x5xf32> to vector<16x5xf32>
    %12 = arith.mulf %10, %11 : vector<16x5xf32>
    %13 = arith.addf %4, %12 : vector<16x5xf32>
    %14 = vector.extract_strided_slice %2 {offsets = [1, 0], sizes = [1, 5], strides = [1, 1]} : vector<2x5xf32> to vector<1x5xf32>
    %15 = vector.broadcast %14 : vector<1x5xf32> to vector<16x5xf32>
    %16 = arith.mulf %0, %15 : vector<16x5xf32>
    %cst_7 = arith.constant dense<0.000000e+00> : vector<16xf32>
    %17 = vector.multi_reduction <add>, %16, %cst_7 [1] : vector<16x5xf32> to vector<16xf32>
    %18 = vector.shape_cast %17 : vector<16xf32> to vector<16x1xf32>
    %19 = vector.broadcast %18 : vector<16x1xf32> to vector<16x5xf32>
    %20 = vector.broadcast %14 : vector<1x5xf32> to vector<16x5xf32>
    %21 = arith.mulf %19, %20 : vector<16x5xf32>
    %22 = arith.addf %13, %21 : vector<16x5xf32>
    %23 = vector.broadcast %3 : vector<1x5xf32> to vector<16x5xf32>
    %24 = arith.addf %22, %23 : vector<16x5xf32>
    %cst_8 = arith.constant 0.000000e+00 : f32
    %25 = vector.broadcast %cst_8 : f32 to vector<16x5xf32>
    %26 = arith.maximumf %24, %25 : vector<16x5xf32>
    %c0_9 = arith.constant 0 : index
    %c0_10 = arith.constant 0 : index
    %27 = vector.load %arg3[%c0_9, %c0_10] : memref<16x40xf32, #tpu.memory_space<vmem>>, vector<16x5xf32>
    tpu.vector_store %arg3[%c0_9, %c0_10], %26 {strides = array<i32>} : memref<16x40xf32, #tpu.memory_space<vmem>>, vector<16x5xf32>,
    %c0_11 = arith.constant 0 : index
    %c5 = arith.constant 5 : index
    %28 = vector.load %arg0[%c0_11, %c5] : memref<16x40xf32, #tpu.memory_space<vmem>>, vector<16x5xf32>
    %c1 = arith.constant 1 : index
    %c0_12 = arith.constant 0 : index
    %c0_13 = arith.constant 0 : index
    %29 = vector.load %arg1[%c1, %c0_12, %c0_13] : memref<8x2x5xf32, #tpu.memory_space<vmem>>, vector<1x2x5xf32>
    %30 = vector.shape_cast %29 : vector<1x2x5xf32> to vector<2x5xf32>
    %c0_14 = arith.constant 0 : index
    %c5_15 = arith.constant 5 : index
    %31 = vector.load %arg2[%c0_14, %c5_15] : memref<1x40xf32, #tpu.memory_space<vmem>>, vector<1x5xf32>
    %cst_16 = arith.constant 0.000000e+00 : f32
    %32 = vector.broadcast %cst_16 : f32 to vector<16x5xf32>
    %33 = vector.extract_strided_slice %30 {offsets = [0, 0], sizes = [1, 5], strides = [1, 1]} : vector<2x5xf32> to vector<1x5xf32>
    %34 = vector.broadcast %33 : vector<1x5xf32> to vector<16x5xf32>
    %35 = arith.mulf %28, %34 : vector<16x5xf32>
    %cst_17 = arith.constant dense<0.000000e+00> : vector<16xf32>
    %36 = vector.multi_reduction <add>, %35, %cst_17 [1] : vector<16x5xf32> to vector<16xf32>
    %37 = vector.shape_cast %36 : vector<16xf32> to vector<16x1xf32>
    %38 = vector.broadcast %37 : vector<16x1xf32> to vector<16x5xf32>
    %39 = vector.broadcast %33 : vector<1x5xf32> to vector<16x5xf32>
    %40 = arith.mulf %38, %39 : vector<16x5xf32>
    %41 = arith.addf %32, %40 : vector<16x5xf32>
    %42 = vector.extract_strided_slice %30 {offsets = [1, 0], sizes = [1, 5], strides = [1, 1]} : vector<2x5xf32> to vector<1x5xf32>
    %43 = vector.broadcast %42 : vector<1x5xf32> to vector<16x5xf32>
    %44 = arith.mulf %28, %43 : vector<16x5xf32>
    %cst_18 = arith.constant dense<0.000000e+00> : vector<16xf32>
    %45 = vector.multi_reduction <add>, %44, %cst_18 [1] : vector<16x5xf32> to vector<16xf32>
    %46 = vector.shape_cast %45 : vector<16xf32> to vector<16x1xf32>
    %47 = vector.broadcast %46 : vector<16x1xf32> to vector<16x5xf32>
    %48 = vector.broadcast %42 : vector<1x5xf32> to vector<16x5xf32>
    %49 = arith.mulf %47, %48 : vector<16x5xf32>
    %50 = arith.addf %41, %49 : vector<16x5xf32>
    %51 = vector.broadcast %31 : vector<1x5xf32> to vector<16x5xf32>
    %52 = arith.addf %50, %51 : vector<16x5xf32>
    %cst_19 = arith.constant 0.000000e+00 : f32
    %53 = vector.broadcast %cst_19 : f32 to vector<16x5xf32>
    %54 = arith.maximumf %52, %53 : vector<16x5xf32>
    %c0_20 = arith.constant 0 : index
    %c5_21 = arith.constant 5 : index
    %55 = vector.load %arg3[%c0_20, %c5_21] : memref<16x40xf32, #tpu.memory_space<vmem>>, vector<16x5xf32>
    tpu.vector_store %arg3[%c0_20, %c5_21], %54 {strides = array<i32>} : memref<16x40xf32, #tpu.memory_space<vmem>>, vector<16x5xf32>,
    %c0_22 = arith.constant 0 : index
    %c10 = arith.constant 10 : index
    %56 = vector.load %arg0[%c0_22, %c10] : memref<16x40xf32, #tpu.memory_space<vmem>>, vector<16x5xf32>
    %c2 = arith.constant 2 : index
    %c0_23 = arith.constant 0 : index
    %c0_24 = arith.constant 0 : index
    %57 = vector.load %arg1[%c2, %c0_23, %c0_24] : memref<8x2x5xf32, #tpu.memory_space<vmem>>, vector<1x2x5xf32>
    %58 = vector.shape_cast %57 : vector<1x2x5xf32> to vector<2x5xf32>
    %c0_25 = arith.constant 0 : index
    %c10_26 = arith.constant 10 : index
    %59 = vector.load %arg2[%c0_25, %c10_26] : memref<1x40xf32, #tpu.memory_space<vmem>>, vector<1x5xf32>
    %cst_27 = arith.constant 0.000000e+00 : f32
    %60 = vector.broadcast %cst_27 : f32 to vector<16x5xf32>
    %61 = vector.extract_strided_slice %58 {offsets = [0, 0], sizes = [1, 5], strides = [1, 1]} : vector<2x5xf32> to vector<1x5xf32>
    %62 = vector.broadcast %61 : vector<1x5xf32> to vector<16x5xf32>
    %63 = arith.mulf %56, %62 : vector<16x5xf32>
    %cst_28 = arith.constant dense<0.000000e+00> : vector<16xf32>
    %64 = vector.multi_reduction <add>, %63, %cst_28 [1] : vector<16x5xf32> to vector<16xf32>
    %65 = vector.shape_cast %64 : vector<16xf32> to vector<16x1xf32>
    %66 = vector.broadcast %65 : vector<16x1xf32> to vector<16x5xf32>
    %67 = vector.broadcast %61 : vector<1x5xf32> to vector<16x5xf32>
    %68 = arith.mulf %66, %67 : vector<16x5xf32>
    %69 = arith.addf %60, %68 : vector<16x5xf32>
    %70 = vector.extract_strided_slice %58 {offsets = [1, 0], sizes = [1, 5], strides = [1, 1]} : vector<2x5xf32> to vector<1x5xf32>
    %71 = vector.broadcast %70 : vector<1x5xf32> to vector<16x5xf32>
    %72 = arith.mulf %56, %71 : vector<16x5xf32>
    %cst_29 = arith.constant dense<0.000000e+00> : vector<16xf32>
    %73 = vector.multi_reduction <add>, %72, %cst_29 [1] : vector<16x5xf32> to vector<16xf32>
    %74 = vector.shape_cast %73 : vector<16xf32> to vector<16x1xf32>
    %75 = vector.broadcast %74 : vector<16x1xf32> to vector<16x5xf32>
    %76 = vector.broadcast %70 : vector<1x5xf32> to vector<16x5xf32>
    %77 = arith.mulf %75, %76 : vector<16x5xf32>
    %78 = arith.addf %69, %77 : vector<16x5xf32>
    %79 = vector.broadcast %59 : vector<1x5xf32> to vector<16x5xf32>
    %80 = arith.addf %78, %79 : vector<16x5xf32>
    %cst_30 = arith.constant 0.000000e+00 : f32
    %81 = vector.broadcast %cst_30 : f32 to vector<16x5xf32>
    %82 = arith.maximumf %80, %81 : vector<16x5xf32>
    %c0_31 = arith.constant 0 : index
    %c10_32 = arith.constant 10 : index
    %83 = vector.load %arg3[%c0_31, %c10_32] : memref<16x40xf32, #tpu.memory_space<vmem>>, vector<16x5xf32>
    tpu.vector_store %arg3[%c0_31, %c10_32], %82 {strides = array<i32>} : memref<16x40xf32, #tpu.memory_space<vmem>>, vector<16x5xf32>,
    %c0_33 = arith.constant 0 : index
    %c15 = arith.constant 15 : index
    %84 = vector.load %arg0[%c0_33, %c15] : memref<16x40xf32, #tpu.memory_space<vmem>>, vector<16x5xf32>
    %c3 = arith.constant 3 : index
    %c0_34 = arith.constant 0 : index
    %c0_35 = arith.constant 0 : index
    %85 = vector.load %arg1[%c3, %c0_34, %c0_35] : memref<8x2x5xf32, #tpu.memory_space<vmem>>, vector<1x2x5xf32>
    %86 = vector.shape_cast %85 : vector<1x2x5xf32> to vector<2x5xf32>
    %c0_36 = arith.constant 0 : index
    %c15_37 = arith.constant 15 : index
    %87 = vector.load %arg2[%c0_36, %c15_37] : memref<1x40xf32, #tpu.memory_space<vmem>>, vector<1x5xf32>
    %cst_38 = arith.constant 0.000000e+00 : f32
    %88 = vector.broadcast %cst_38 : f32 to vector<16x5xf32>
    %89 = vector.extract_strided_slice %86 {offsets = [0, 0], sizes = [1, 5], strides = [1, 1]} : vector<2x5xf32> to vector<1x5xf32>
    %90 = vector.broadcast %89 : vector<1x5xf32> to vector<16x5xf32>
    %91 = arith.mulf %84, %90 : vector<16x5xf32>
    %cst_39 = arith.constant dense<0.000000e+00> : vector<16xf32>
    %92 = vector.multi_reduction <add>, %91, %cst_39 [1] : vector<16x5xf32> to vector<16xf32>
    %93 = vector.shape_cast %92 : vector<16xf32> to vector<16x1xf32>
    %94 = vector.broadcast %93 : vector<16x1xf32> to vector<16x5xf32>
    %95 = vector.broadcast %89 : vector<1x5xf32> to vector<16x5xf32>
    %96 = arith.mulf %94, %95 : vector<16x5xf32>
    %97 = arith.addf %88, %96 : vector<16x5xf32>
    %98 = vector.extract_strided_slice %86 {offsets = [1, 0], sizes = [1, 5], strides = [1, 1]} : vector<2x5xf32> to vector<1x5xf32>
    %99 = vector.broadcast %98 : vector<1x5xf32> to vector<16x5xf32>
    %100 = arith.mulf %84, %99 : vector<16x5xf32>
    %cst_40 = arith.constant dense<0.000000e+00> : vector<16xf32>
    %101 = vector.multi_reduction <add>, %100, %cst_40 [1] : vector<16x5xf32> to vector<16xf32>
    %102 = vector.shape_cast %101 : vector<16xf32> to vector<16x1xf32>
    %103 = vector.broadcast %102 : vector<16x1xf32> to vector<16x5xf32>
    %104 = vector.broadcast %98 : vector<1x5xf32> to vector<16x5xf32>
    %105 = arith.mulf %103, %104 : vector<16x5xf32>
    %106 = arith.addf %97, %105 : vector<16x5xf32>
    %107 = vector.broadcast %87 : vector<1x5xf32> to vector<16x5xf32>
    %108 = arith.addf %106, %107 : vector<16x5xf32>
    %cst_41 = arith.constant 0.000000e+00 : f32
    %109 = vector.broadcast %cst_41 : f32 to vector<16x5xf32>
    %110 = arith.maximumf %108, %109 : vector<16x5xf32>
    %c0_42 = arith.constant 0 : index
    %c15_43 = arith.constant 15 : index
    %111 = vector.load %arg3[%c0_42, %c15_43] : memref<16x40xf32, #tpu.memory_space<vmem>>, vector<16x5xf32>
    tpu.vector_store %arg3[%c0_42, %c15_43], %110 {strides = array<i32>} : memref<16x40xf32, #tpu.memory_space<vmem>>, vector<16x5xf32>,
    %c0_44 = arith.constant 0 : index
    %c20 = arith.constant 20 : index
    %112 = vector.load %arg0[%c0_44, %c20] : memref<16x40xf32, #tpu.memory_space<vmem>>, vector<16x5xf32>
    %c4 = arith.constant 4 : index
    %c0_45 = arith.constant 0 : index
    %c0_46 = arith.constant 0 : index
    %113 = vector.load %arg1[%c4, %c0_45, %c0_46] : memref<8x2x5xf32, #tpu.memory_space<vmem>>, vector<1x2x5xf32>
    %114 = vector.shape_cast %113 : vector<1x2x5xf32> to vector<2x5xf32>
    %c0_47 = arith.constant 0 : index
    %c20_48 = arith.constant 20 : index
    %115 = vector.load %arg2[%c0_47, %c20_48] : memref<1x40xf32, #tpu.memory_space<vmem>>, vector<1x5xf32>
    %cst_49 = arith.constant 0.000000e+00 : f32
    %116 = vector.broadcast %cst_49 : f32 to vector<16x5xf32>
    %117 = vector.extract_strided_slice %114 {offsets = [0, 0], sizes = [1, 5], strides = [1, 1]} : vector<2x5xf32> to vector<1x5xf32>
    %118 = vector.broadcast %117 : vector<1x5xf32> to vector<16x5xf32>
    %119 = arith.mulf %112, %118 : vector<16x5xf32>
    %cst_50 = arith.constant dense<0.000000e+00> : vector<16xf32>
    %120 = vector.multi_reduction <add>, %119, %cst_50 [1] : vector<16x5xf32> to vector<16xf32>
    %121 = vector.shape_cast %120 : vector<16xf32> to vector<16x1xf32>
    %122 = vector.broadcast %121 : vector<16x1xf32> to vector<16x5xf32>
    %123 = vector.broadcast %117 : vector<1x5xf32> to vector<16x5xf32>
    %124 = arith.mulf %122, %123 : vector<16x5xf32>
    %125 = arith.addf %116, %124 : vector<16x5xf32>
    %126 = vector.extract_strided_slice %114 {offsets = [1, 0], sizes = [1, 5], strides = [1, 1]} : vector<2x5xf32> to vector<1x5xf32>
    %127 = vector.broadcast %126 : vector<1x5xf32> to vector<16x5xf32>
    %128 = arith.mulf %112, %127 : vector<16x5xf32>
    %cst_51 = arith.constant dense<0.000000e+00> : vector<16xf32>
    %129 = vector.multi_reduction <add>, %128, %cst_51 [1] : vector<16x5xf32> to vector<16xf32>
    %130 = vector.shape_cast %129 : vector<16xf32> to vector<16x1xf32>
    %131 = vector.broadcast %130 : vector<16x1xf32> to vector<16x5xf32>
    %132 = vector.broadcast %126 : vector<1x5xf32> to vector<16x5xf32>
    %133 = arith.mulf %131, %132 : vector<16x5xf32>
    %134 = arith.addf %125, %133 : vector<16x5xf32>
    %135 = vector.broadcast %115 : vector<1x5xf32> to vector<16x5xf32>
    %136 = arith.addf %134, %135 : vector<16x5xf32>
    %cst_52 = arith.constant 0.000000e+00 : f32
    %137 = vector.broadcast %cst_52 : f32 to vector<16x5xf32>
    %138 = arith.maximumf %136, %137 : vector<16x5xf32>
    %c0_53 = arith.constant 0 : index
    %c20_54 = arith.constant 20 : index
    %139 = vector.load %arg3[%c0_53, %c20_54] : memref<16x40xf32, #tpu.memory_space<vmem>>, vector<16x5xf32>
    tpu.vector_store %arg3[%c0_53, %c20_54], %138 {strides = array<i32>} : memref<16x40xf32, #tpu.memory_space<vmem>>, vector<16x5xf32>,
    %c0_55 = arith.constant 0 : index
    %c25 = arith.constant 25 : index
    %140 = vector.load %arg0[%c0_55, %c25] : memref<16x40xf32, #tpu.memory_space<vmem>>, vector<16x5xf32>
    %c5_56 = arith.constant 5 : index
    %c0_57 = arith.constant 0 : index
    %c0_58 = arith.constant 0 : index
    %141 = vector.load %arg1[%c5_56, %c0_57, %c0_58] : memref<8x2x5xf32, #tpu.memory_space<vmem>>, vector<1x2x5xf32>
    %142 = vector.shape_cast %141 : vector<1x2x5xf32> to vector<2x5xf32>
    %c0_59 = arith.constant 0 : index
    %c25_60 = arith.constant 25 : index
    %143 = vector.load %arg2[%c0_59, %c25_60] : memref<1x40xf32, #tpu.memory_space<vmem>>, vector<1x5xf32>
    %cst_61 = arith.constant 0.000000e+00 : f32
    %144 = vector.broadcast %cst_61 : f32 to vector<16x5xf32>
    %145 = vector.extract_strided_slice %142 {offsets = [0, 0], sizes = [1, 5], strides = [1, 1]} : vector<2x5xf32> to vector<1x5xf32>
    %146 = vector.broadcast %145 : vector<1x5xf32> to vector<16x5xf32>
    %147 = arith.mulf %140, %146 : vector<16x5xf32>
    %cst_62 = arith.constant dense<0.000000e+00> : vector<16xf32>
    %148 = vector.multi_reduction <add>, %147, %cst_62 [1] : vector<16x5xf32> to vector<16xf32>
    %149 = vector.shape_cast %148 : vector<16xf32> to vector<16x1xf32>
    %150 = vector.broadcast %149 : vector<16x1xf32> to vector<16x5xf32>
    %151 = vector.broadcast %145 : vector<1x5xf32> to vector<16x5xf32>
    %152 = arith.mulf %150, %151 : vector<16x5xf32>
    %153 = arith.addf %144, %152 : vector<16x5xf32>
    %154 = vector.extract_strided_slice %142 {offsets = [1, 0], sizes = [1, 5], strides = [1, 1]} : vector<2x5xf32> to vector<1x5xf32>
    %155 = vector.broadcast %154 : vector<1x5xf32> to vector<16x5xf32>
    %156 = arith.mulf %140, %155 : vector<16x5xf32>
    %cst_63 = arith.constant dense<0.000000e+00> : vector<16xf32>
    %157 = vector.multi_reduction <add>, %156, %cst_63 [1] : vector<16x5xf32> to vector<16xf32>
    %158 = vector.shape_cast %157 : vector<16xf32> to vector<16x1xf32>
    %159 = vector.broadcast %158 : vector<16x1xf32> to vector<16x5xf32>
    %160 = vector.broadcast %154 : vector<1x5xf32> to vector<16x5xf32>
    %161 = arith.mulf %159, %160 : vector<16x5xf32>
    %162 = arith.addf %153, %161 : vector<16x5xf32>
    %163 = vector.broadcast %143 : vector<1x5xf32> to vector<16x5xf32>
    %164 = arith.addf %162, %163 : vector<16x5xf32>
    %cst_64 = arith.constant 0.000000e+00 : f32
    %165 = vector.broadcast %cst_64 : f32 to vector<16x5xf32>
    %166 = arith.maximumf %164, %165 : vector<16x5xf32>
    %c0_65 = arith.constant 0 : index
    %c25_66 = arith.constant 25 : index
    %167 = vector.load %arg3[%c0_65, %c25_66] : memref<16x40xf32, #tpu.memory_space<vmem>>, vector<16x5xf32>
    tpu.vector_store %arg3[%c0_65, %c25_66], %166 {strides = array<i32>} : memref<16x40xf32, #tpu.memory_space<vmem>>, vector<16x5xf32>,
    %c0_67 = arith.constant 0 : index
    %c30 = arith.constant 30 : index
    %168 = vector.load %arg0[%c0_67, %c30] : memref<16x40xf32, #tpu.memory_space<vmem>>, vector<16x5xf32>
    %c6 = arith.constant 6 : index
    %c0_68 = arith.constant 0 : index
    %c0_69 = arith.constant 0 : index
    %169 = vector.load %arg1[%c6, %c0_68, %c0_69] : memref<8x2x5xf32, #tpu.memory_space<vmem>>, vector<1x2x5xf32>
    %170 = vector.shape_cast %169 : vector<1x2x5xf32> to vector<2x5xf32>
    %c0_70 = arith.constant 0 : index
    %c30_71 = arith.constant 30 : index
    %171 = vector.load %arg2[%c0_70, %c30_71] : memref<1x40xf32, #tpu.memory_space<vmem>>, vector<1x5xf32>
    %cst_72 = arith.constant 0.000000e+00 : f32
    %172 = vector.broadcast %cst_72 : f32 to vector<16x5xf32>
    %173 = vector.extract_strided_slice %170 {offsets = [0, 0], sizes = [1, 5], strides = [1, 1]} : vector<2x5xf32> to vector<1x5xf32>
    %174 = vector.broadcast %173 : vector<1x5xf32> to vector<16x5xf32>
    %175 = arith.mulf %168, %174 : vector<16x5xf32>
    %cst_73 = arith.constant dense<0.000000e+00> : vector<16xf32>
    %176 = vector.multi_reduction <add>, %175, %cst_73 [1] : vector<16x5xf32> to vector<16xf32>
    %177 = vector.shape_cast %176 : vector<16xf32> to vector<16x1xf32>
    %178 = vector.broadcast %177 : vector<16x1xf32> to vector<16x5xf32>
    %179 = vector.broadcast %173 : vector<1x5xf32> to vector<16x5xf32>
    %180 = arith.mulf %178, %179 : vector<16x5xf32>
    %181 = arith.addf %172, %180 : vector<16x5xf32>
    %182 = vector.extract_strided_slice %170 {offsets = [1, 0], sizes = [1, 5], strides = [1, 1]} : vector<2x5xf32> to vector<1x5xf32>
    %183 = vector.broadcast %182 : vector<1x5xf32> to vector<16x5xf32>
    %184 = arith.mulf %168, %183 : vector<16x5xf32>
    %cst_74 = arith.constant dense<0.000000e+00> : vector<16xf32>
    %185 = vector.multi_reduction <add>, %184, %cst_74 [1] : vector<16x5xf32> to vector<16xf32>
    %186 = vector.shape_cast %185 : vector<16xf32> to vector<16x1xf32>
    %187 = vector.broadcast %186 : vector<16x1xf32> to vector<16x5xf32>
    %188 = vector.broadcast %182 : vector<1x5xf32> to vector<16x5xf32>
    %189 = arith.mulf %187, %188 : vector<16x5xf32>
    %190 = arith.addf %181, %189 : vector<16x5xf32>
    %191 = vector.broadcast %171 : vector<1x5xf32> to vector<16x5xf32>
    %192 = arith.addf %190, %191 : vector<16x5xf32>
    %cst_75 = arith.constant 0.000000e+00 : f32
    %193 = vector.broadcast %cst_75 : f32 to vector<16x5xf32>
    %194 = arith.maximumf %192, %193 : vector<16x5xf32>
    %c0_76 = arith.constant 0 : index
    %c30_77 = arith.constant 30 : index
    %195 = vector.load %arg3[%c0_76, %c30_77] : memref<16x40xf32, #tpu.memory_space<vmem>>, vector<16x5xf32>
    tpu.vector_store %arg3[%c0_76, %c30_77], %194 {strides = array<i32>} : memref<16x40xf32, #tpu.memory_space<vmem>>, vector<16x5xf32>,
    %c0_78 = arith.constant 0 : index
    %c35 = arith.constant 35 : index
    %196 = vector.load %arg0[%c0_78, %c35] : memref<16x40xf32, #tpu.memory_space<vmem>>, vector<16x5xf32>
    %c7 = arith.constant 7 : index
    %c0_79 = arith.constant 0 : index
    %c0_80 = arith.constant 0 : index
    %197 = vector.load %arg1[%c7, %c0_79, %c0_80] : memref<8x2x5xf32, #tpu.memory_space<vmem>>, vector<1x2x5xf32>
    %198 = vector.shape_cast %197 : vector<1x2x5xf32> to vector<2x5xf32>
    %c0_81 = arith.constant 0 : index
    %c35_82 = arith.constant 35 : index
    %199 = vector.load %arg2[%c0_81, %c35_82] : memref<1x40xf32, #tpu.memory_space<vmem>>, vector<1x5xf32>
    %cst_83 = arith.constant 0.000000e+00 : f32
    %200 = vector.broadcast %cst_83 : f32 to vector<16x5xf32>
    %201 = vector.extract_strided_slice %198 {offsets = [0, 0], sizes = [1, 5], strides = [1, 1]} : vector<2x5xf32> to vector<1x5xf32>
    %202 = vector.broadcast %201 : vector<1x5xf32> to vector<16x5xf32>
    %203 = arith.mulf %196, %202 : vector<16x5xf32>
    %cst_84 = arith.constant dense<0.000000e+00> : vector<16xf32>
    %204 = vector.multi_reduction <add>, %203, %cst_84 [1] : vector<16x5xf32> to vector<16xf32>
    %205 = vector.shape_cast %204 : vector<16xf32> to vector<16x1xf32>
    %206 = vector.broadcast %205 : vector<16x1xf32> to vector<16x5xf32>
    %207 = vector.broadcast %201 : vector<1x5xf32> to vector<16x5xf32>
    %208 = arith.mulf %206, %207 : vector<16x5xf32>
    %209 = arith.addf %200, %208 : vector<16x5xf32>
    %210 = vector.extract_strided_slice %198 {offsets = [1, 0], sizes = [1, 5], strides = [1, 1]} : vector<2x5xf32> to vector<1x5xf32>
    %211 = vector.broadcast %210 : vector<1x5xf32> to vector<16x5xf32>
    %212 = arith.mulf %196, %211 : vector<16x5xf32>
    %cst_85 = arith.constant dense<0.000000e+00> : vector<16xf32>
    %213 = vector.multi_reduction <add>, %212, %cst_85 [1] : vector<16x5xf32> to vector<16xf32>
    %214 = vector.shape_cast %213 : vector<16xf32> to vector<16x1xf32>
    %215 = vector.broadcast %214 : vector<16x1xf32> to vector<16x5xf32>
    %216 = vector.broadcast %210 : vector<1x5xf32> to vector<16x5xf32>
    %217 = arith.mulf %215, %216 : vector<16x5xf32>
    %218 = arith.addf %209, %217 : vector<16x5xf32>
    %219 = vector.broadcast %199 : vector<1x5xf32> to vector<16x5xf32>
    %220 = arith.addf %218, %219 : vector<16x5xf32>
    %cst_86 = arith.constant 0.000000e+00 : f32
    %221 = vector.broadcast %cst_86 : f32 to vector<16x5xf32>
    %222 = arith.maximumf %220, %221 : vector<16x5xf32>
    %c0_87 = arith.constant 0 : index
    %c35_88 = arith.constant 35 : index
    %223 = vector.load %arg3[%c0_87, %c35_88] : memref<16x40xf32, #tpu.memory_space<vmem>>, vector<16x5xf32>
    tpu.vector_store %arg3[%c0_87, %c35_88], %222 {strides = array<i32>} : memref<16x40xf32, #tpu.memory_space<vmem>>, vector<16x5xf32>,
    return
  }
}

</mosaic_0001>

<bundles_post_ra>
// kernel: model_forward.1
= control target key start
LH: loop header
LB: loop body
LE: loop exit
PB: predicated region body
PF: predicated region fallthrough
CT: control target
= control target key end

     0   :  { %vm21_vm0 = vcmask 39936   ;;  %s613_s22 = smov 123   ;;  %s614_s25 = smov 118   ;;  %vm126_vm1 = vcmask 80936   ;;  %vm201_vm2 = vcmask 121936   ;;  %vm276_vm3 = vcmask 162936   ;;  %s962_s0 = inlined_call_operand.vmem [shape: f32[16,40], index: 0, kind: input, shape index: {}]   ;;  %s963_s1 = inlined_call_operand.vmem [shape: f32[8,2,5], index: 1, kind: input, shape index: {}]   ;;  %s964_s2 = inlined_call_operand.vmem [shape: f32[1,40], index: 2, kind: input, shape index: {}]   ;;  %s965_s3 = inlined_call_operand.vmem [shape: f32[16,40], index: 3, kind: output, shape index: {}]  }
   0x1   :  { %v649_v0 = vld [vmem:[%s962_s0] sm:$0xff]  ;;  %v659_v6 = vld [vmem:[%s962_s0 + $0x8] sm:$0xff]  ;;  %s612_s0 = smov 5   ;;  %s615_s30 = smov 15   ;;  %vm351_vm4 = vcmask 203936   ;;  %vm426_vm5 = vcmask 244936  }
   0x2   :  { %v16_v1 = vld [vmem:[%s963_s1] sm:$0x3]  ;;  %v583_v13 = vld [vmem:[%s963_s1 + $0x2] sm:$0x3]  ;;  %v585_v18 = vld [vmem:[%s963_s1 + $0x6] sm:$0x3] }
   0x3   :  { %v32_v2 = vperm.slane %v16_v1, 1  ;;  %v18_v3 = vperm.slane %v16_v1, 0  ;;  %v670_v14 = vperm.slane %v583_v13, 0  ;;  %v604_v15 = vld [vmem:[%s964_s2] ss:$0 sm:$0xff]  ;;  %v682_v17 = vperm.slane %v583_v13, 1 }
   0x4   :  { %v605_v16 = vld [vmem:[%s964_s2] ss:$0 sm:$0xff]  ;;  %v687_v19 = vperm.slane %v585_v18, 0  ;;  %v584_v20 = vld [vmem:[%s963_s1 + $0x4] sm:$0x3]  ;;  %s616_s4 = smov 10  }
   0x5   :  { %v33_v4 = vmul.f32 %v32_v2, %v649_v0  ;;  %v19_v5 = vmul.f32 %v18_v3, %v649_v0  ;;  %v34_v9 = vmul.f32 %v32_v2, %v659_v6  ;;  %v20_v10 = vmul.f32 %v18_v3, %v659_v6  ;;  %61 = vrot.lane.b32.xlu2 %v670_v14, %s612_s0  ;;  %v606_v30 = vld [vmem:[%s964_s2] ss:$0 sm:$0xff]  ;;  %s617_s11 = smov 113   ;;  %s618_s16 = smov 20  }
   0x6   :  { %v696_v21 = vperm.slane %v584_v20, 0  ;;  %v700_v22 = vperm.slane %v584_v20, 1  ;;  %v704_v23 = vperm.slane %v585_v18, 1  ;;  %s619_s17 = smov 108   ;;  %s621_s23 = smov 103   ;;  %vm501_vm6 = vcmask 285936  }
   0x7   :  { %v35_v7 = vsel %vm21_vm0, %v33_v4, 0.0  ;;  %v22_v8 = vsel %vm21_vm0, %v19_v5, 0.0  ;;  %v38_v11 = vsel %vm21_vm0, %v34_v9, 0.0  ;;  %v25_v12 = vsel %vm21_vm0, %v20_v10, 0.0  ;;  %s622_s10 = smov 30   ;;  %s623_s15 = smov 35  }
   0x8   :  { %36 = vadd.xlane.f32.xlu1 %v35_v7  ;;  %23 = vadd.xlane.f32.xlu0 %v22_v8  ;;  %s624_s19 = smov 98   ;;  %s625_s20 = smov 93   ;;  %vm576_vm7 = vcmask 326936  }
   0xd   :  { %111 = vrot.lane.b32.xlu2 %v604_v15, %s613_s22 }
  0x10   :  { %39 = vadd.xlane.f32.xlu1 %v38_v11  ;;  %26 = vadd.xlane.f32.xlu0 %v25_v12 }
  0x15   :  { %186 = vrot.lane.b32.xlu2 %v605_v16, %s614_s25 }
  0x1d   :  { %211 = vrot.lane.b32.xlu2 %v687_v19, %s615_s30 }
  0x29   :  { %86 = vrot.lane.b32.xlu1 %v682_v17, %s612_s0 }
  0x31   :  { %136 = vrot.lane.b32.xlu1 %v696_v21, %s616_s4 }
  0x39   :  { %161 = vrot.lane.b32.xlu1 %v700_v22, %s616_s4 }
  0x41   :  { %236 = vrot.lane.b32.xlu1 %v704_v23, %s615_s30 }
  0x5f   :  { %v62_v24 = vpop.permute.xlu2 %61 }
  0x60   :  { %v64_v25 = vmul.f32 %v62_v24, %v649_v0  ;;  %v65_v26 = vmul.f32 %v62_v24, %v659_v6 }
  0x62   :  { %68 = vrot.lane.b32.xlu2 %v64_v25, %s613_s22  ;;  %70 = vrot.lane.b32.xlu0 %v65_v26, %s613_s22  ;;  %v607_v25 = vld [vmem:[%s964_s2] ss:$0 sm:$0xff] }
  0x67   :  { %v723_v43 = vpop.permute.xlu2 %111 }
  0x6f   :  { %v729_v48 = vpop.permute.xlu2 %186 }
  0x77   :  { %v212_v52 = vpop.permute.xlu2 %211 }
  0x78   :  { %v215_v53 = vmul.f32 %v212_v52, %v659_v6  ;;  %v214_v55 = vmul.f32 %v212_v52, %v649_v0 }
  0x7b   :  { %v37_v27 = vpop.xlane.xlu1 %36  ;;  %v24_v28 = vpop.xlane.xlu0 %23 }
  0x7c   :  { %v41_v29 = vmul.f32 %v37_v27, %v32_v2  ;;  %v28_v31 = vmul.f32 %v24_v28, %v18_v3  ;;  %v586_v28 = vld [vmem:[%s963_s1 + $0x8] sm:$0x3] }
  0x7e   :  { %v43_v32 = vadd.f32 %v41_v29, %v28_v31  ;;  %v766_v29 = vperm.slane %v586_v28, 0 }
  0x80   :  { %v48_v33 = vadd.f32 %v606_v30, %v43_v32 }
  0x82   :  { %v50_v34 = vmax.f32 %v48_v33, 0.0 }
  0x83   :  { %v40_v35 = vpop.xlane.xlu1 %39  ;;  %v27_v36 = vpop.xlane.xlu0 %26 }
  0x84   :  { %v42_v37 = vmul.f32 %v40_v35, %v32_v2  ;;  %v29_v38 = vmul.f32 %v27_v36, %v18_v3  ;;  %52 = vst.msk [vmem:[%s965_s3] sm:$0xff] %vm21_vm0, %v50_v34 }
  0x86   :  { %v44_v39 = vadd.f32 %v42_v37, %v29_v38 }
  0x88   :  { %v49_v40 = vadd.f32 %v606_v30, %v44_v39 }
  0x8a   :  { %v51_v41 = vmax.f32 %v49_v40, 0.0 }
  0x8c   :  { %53 = vst.msk [vmem:[%s965_s3 + $0x8] sm:$0xff] %vm21_vm0, %v51_v41 }
  0x9b   :  { %v87_v42 = vpop.permute.xlu1 %86 }
  0x9c   :  { %v89_v44 = vmul.f32 %v87_v42, %v649_v0  ;;  %v90_v46 = vmul.f32 %v87_v42, %v659_v6 }
  0x9e   :  { %93 = vrot.lane.b32.xlu0 %v89_v44, %s613_s22 }
  0xa3   :  { %v137_v45 = vpop.permute.xlu1 %136 }
  0xa4   :  { %v140_v47 = vmul.f32 %v137_v45, %v659_v6  ;;  %v139_v50 = vmul.f32 %v137_v45, %v649_v0 }
  0xa6   :  { %145 = vrot.lane.b32.xlu2 %v140_v47, %s614_s25  ;;  %95 = vrot.lane.b32.xlu0 %v90_v46, %s613_s22  ;;  %s620_s22 = smov 25  }
  0xab   :  { %v162_v49 = vpop.permute.xlu1 %161 }
  0xac   :  { %v164_v51 = vmul.f32 %v162_v49, %v649_v0  ;;  %v165_v54 = vmul.f32 %v162_v49, %v659_v6 }
  0xae   :  { %168 = vrot.lane.b32.xlu1 %v164_v51, %s614_s25  ;;  %143 = vrot.lane.b32.xlu0 %v139_v50, %s614_s25  ;;  %v782_v51 = vperm.slane %v586_v28, 1 }
  0xb3   :  { %v237_v56 = vpop.permute.xlu1 %236 }
  0xb4   :  { %v239_v57 = vmul.f32 %v237_v56, %v649_v0  ;;  %v240_v58 = vmul.f32 %v237_v56, %v659_v6 }
  0xb6   :  { %170 = vrot.lane.b32.xlu1 %v165_v54, %s614_s25  ;;  %220 = vrot.lane.b32.xlu0 %v215_v53, %s617_s11 }
  0xbc   :  { %v69_v61 = vpop.permute.xlu2 %68 }
  0xbd   :  { %v74_v62 = vsel %vm21_vm0, %v69_v61, 0.0  ;;  %v608_v61 = vld [vmem:[%s964_s2] ss:$0 sm:$0xff] }
  0xbe   :  { %218 = vrot.lane.b32.xlu1 %v214_v55, %s617_s11 }
  0xc6   :  { %243 = vrot.lane.b32.xlu1 %v239_v57, %s617_s11 }
  0xce   :  { %245 = vrot.lane.b32.xlu1 %v240_v58, %s617_s11 }
  0xd4   :  { %v71_v59 = vpop.permute.xlu0 %70 }
  0xd5   :  { %v77_v60 = vsel %vm21_vm0, %v71_v59, 0.0 }
  0xd6   :  { %78 = vadd.xlane.f32.xlu2 %v77_v60 }
  0xf8   :  { %75 = vadd.xlane.f32.xlu1 %v74_v62  ;;  %v587_v62 = vld [vmem:[%s963_s1 + $0xa] sm:$0x3] }
 0x100   :  { %v146_v4 = vpop.permute.xlu2 %145 }
 0x101   :  { %v152_v9 = vsel %vm21_vm0, %v146_v4, 0.0 }
 0x110   :  { %v94_v63 = vpop.permute.xlu0 %93 }
 0x111   :  { %v99_v1 = vsel %vm21_vm0, %v94_v63, 0.0  ;;  %v796_v63 = vperm.slane %v587_v62, 0 }
 0x112   :  { %100 = vadd.xlane.f32.xlu1 %v99_v1 }
 0x118   :  { %v96_v2 = vpop.permute.xlu0 %95 }
 0x119   :  { %v102_v3 = vsel %vm21_vm0, %v96_v2, 0.0 }
 0x11a   :  { %103 = vadd.xlane.f32.xlu0 %v102_v3 }
 0x120   :  { %v169_v5 = vpop.permute.xlu1 %168  ;;  %v144_v7 = vpop.permute.xlu0 %143 }
 0x121   :  { %v174_v8 = vsel %vm21_vm0, %v169_v5, 0.0  ;;  %v149_v10 = vsel %vm21_vm0, %v144_v7, 0.0 }
 0x122   :  { %175 = vadd.xlane.f32.xlu1 %v174_v8  ;;  %153 = vadd.xlane.f32.xlu0 %v152_v9 }
 0x123   :  { %150 = vadd.xlane.f32.xlu2 %v149_v10 }
 0x128   :  { %v171_v11 = vpop.permute.xlu1 %170  ;;  %v221_v12 = vpop.permute.xlu0 %220 }
 0x129   :  { %v177_v13 = vsel %vm21_vm0, %v171_v11, 0.0  ;;  %v227_v15 = vsel %vm21_vm0, %v221_v12, 0.0 }
 0x12a   :  { %228 = vadd.xlane.f32.xlu0 %v227_v15 }
 0x12b   :  { %178 = vadd.xlane.f32.xlu2 %v177_v13 }
 0x130   :  { %v219_v16 = vpop.permute.xlu1 %218 }
 0x131   :  { %v224_v18 = vsel %vm21_vm0, %v219_v16, 0.0 }
 0x133   :  { %225 = vadd.xlane.f32.xlu2 %v224_v18 }
 0x138   :  { %v244_v20 = vpop.permute.xlu1 %243 }
 0x139   :  { %v249_v24 = vsel %vm21_vm0, %v244_v20, 0.0 }
 0x13b   :  { %250 = vadd.xlane.f32.xlu2 %v249_v24 }
 0x13e   :  { %261 = vrot.lane.b32.xlu0 %v607_v25, %s617_s11 }
 0x140   :  { %v246_v26 = vpop.permute.xlu1 %245 }
 0x141   :  { %v252_v27 = vsel %vm21_vm0, %v246_v26, 0.0 }
 0x142   :  { %253 = vadd.xlane.f32.xlu1 %v252_v27 }
 0x149   :  { %v79_v30 = vpop.xlane.xlu2 %78 }
 0x14a   :  { %v81_v32 = vmul.f32 %v79_v30, %v670_v14 }
 0x153   :  { %286 = vrot.lane.b32.xlu2 %v766_v29, %s618_s16 }
 0x16b   :  { %v76_v1 = vpop.xlane.xlu1 %75 }
 0x16c   :  { %v80_v13 = vmul.f32 %v76_v1, %v670_v14 }
 0x185   :  { %v101_v4 = vpop.xlane.xlu1 %100 }
 0x186   :  { %v105_v12 = vmul.f32 %v101_v4, %v682_v17 }
 0x188   :  { %v107_v15 = vadd.f32 %v105_v12, %v80_v13 }
 0x18a   :  { %v114_v18 = vadd.f32 %v723_v43, %v107_v15 }
 0x18c   :  { %v116_v25 = vmax.f32 %v114_v18, 0.0 }
 0x18d   :  { %v104_v31 = vpop.xlane.xlu0 %103 }
 0x18e   :  { %v106_v33 = vmul.f32 %v104_v31, %v682_v17 }
 0x190   :  { %v772_v34 = vadd.f32 %v106_v33, %v81_v32 }
 0x192   :  { %v115_v14 = vadd.f32 %v723_v43, %v772_v34 }
 0x194   :  { %v117_v17 = vmax.f32 %v115_v14, 0.0 }
 0x195   :  { %v154_v36 = vpop.xlane.xlu0 %153  ;;  %v176_v5 = vpop.xlane.xlu1 %175 }
 0x196   :  { %v151_v35 = vpop.xlane.xlu2 %150  ;;  %v156_v38 = vmul.f32 %v154_v36, %v696_v21  ;;  %v180_v20 = vmul.f32 %v176_v5, %v700_v22 }
 0x197   :  { %v155_v24 = vmul.f32 %v151_v35, %v696_v21 }
 0x199   :  { %v182_v27 = vadd.f32 %v180_v20, %v155_v24 }
 0x19b   :  { %v189_v21 = vadd.f32 %v729_v48, %v182_v27 }
 0x19d   :  { %v229_v54 = vpop.xlane.xlu0 %228  ;;  %v191_v32 = vmax.f32 %v189_v21, 0.0 }
 0x19e   :  { %v179_v37 = vpop.xlane.xlu2 %178  ;;  %v231_v35 = vmul.f32 %v229_v54, %v687_v19 }
 0x19f   :  { %v181_v39 = vmul.f32 %v179_v37, %v700_v22  ;;  %v816_v22 = vperm.slane %v587_v62, 1 }
 0x1a1   :  { %v776_v40 = vadd.f32 %v181_v39, %v156_v38 }
 0x1a3   :  { %v190_v34 = vadd.f32 %v729_v48, %v776_v40 }
 0x1a5   :  { %v192_v37 = vmax.f32 %v190_v34, 0.0 }
 0x1a6   :  { %v226_v41 = vpop.xlane.xlu2 %225 }
 0x1a7   :  { %v230_v44 = vmul.f32 %v226_v41, %v687_v19 }
 0x1ae   :  { %v251_v42 = vpop.xlane.xlu2 %250 }
 0x1af   :  { %v255_v45 = vmul.f32 %v251_v42, %v704_v23 }
 0x1b0   :  { %v262_v57 = vpop.permute.xlu0 %261 }
 0x1b1   :  { %v257_v46 = vadd.f32 %v255_v45, %v230_v44 }
 0x1b3   :  { %v264_v31 = vadd.f32 %v262_v57, %v257_v46 }
 0x1b5   :  { %v254_v7 = vpop.xlane.xlu1 %253  ;;  %v266_v43 = vmax.f32 %v264_v31, 0.0 }
 0x1b6   :  { %v287_v47 = vpop.permute.xlu2 %286  ;;  %v256_v33 = vmul.f32 %v254_v7, %v704_v23 }
 0x1b7   :  { %v289_v49 = vmul.f32 %v287_v47, %v649_v0  ;;  %v290_v50 = vmul.f32 %v287_v47, %v659_v6 }
 0x1b8   :  { %v258_v36 = vadd.f32 %v256_v33, %v231_v35 }
 0x1b9   :  { %295 = vrot.lane.b32.xlu2 %v290_v50, %s619_s17  ;;  %293 = vrot.lane.b32.xlu0 %v289_v49, %s619_s17 }
 0x1ba   :  { %v265_v38 = vadd.f32 %v262_v57, %v258_v36 }
 0x1bc   :  { %v267_v39 = vmax.f32 %v265_v38, 0.0 }
 0x1c1   :  { %311 = vrot.lane.b32.xlu2 %v782_v51, %s618_s16 }
 0x213   :  { %v296_v52 = vpop.permute.xlu2 %295 }
 0x214   :  { %v302_v53 = vsel %vm21_vm0, %v296_v52, 0.0 }
 0x215   :  { %303 = vadd.xlane.f32.xlu1 %v302_v53 }
 0x21b   :  { %v312_v55 = vpop.permute.xlu2 %311 }
 0x21c   :  { %v315_v56 = vmul.f32 %v312_v55, %v659_v6  ;;  %v314_v58 = vmul.f32 %v312_v55, %v649_v0 }
 0x21e   :  { %320 = vrot.lane.b32.xlu2 %v315_v56, %s619_s17 }
 0x22b   :  { %v294_v59 = vpop.permute.xlu0 %293 }
 0x22c   :  { %v299_v60 = vsel %vm21_vm0, %v294_v59, 0.0 }
 0x22d   :  { %300 = vadd.xlane.f32.xlu0 %v299_v60 }
 0x22e   :  { %318 = vrot.lane.b32.xlu1 %v314_v58, %s619_s17 }
 0x241   :  { %336 = vrot.lane.b32.xlu0 %v608_v61, %s619_s17  ;;  %v588_v61 = vld [vmem:[%s963_s1 + $0xc] sm:$0x3] }
 0x242   :  { %v859_v1 = vperm.slane %v588_v61, 0 }
 0x249   :  { %361 = vrot.lane.b32.xlu0 %v796_v63, %s620_s22 }
 0x278   :  { %v321_v2 = vpop.permute.xlu2 %320 }
 0x279   :  { %v327_v3 = vsel %vm21_vm0, %v321_v2, 0.0 }
 0x27a   :  { %328 = vadd.xlane.f32.xlu1 %v327_v3  ;;  %v589_v3 = vld [vmem:[%s963_s1 + $0xe] sm:$0x3] }
 0x27b   :  { %v870_v4 = vperm.slane %v589_v3, 1  ;;  %v877_v7 = vperm.slane %v589_v3, 0 }
 0x288   :  { %v304_v8 = vpop.xlane.xlu1 %303 }
 0x289   :  { %v306_v42 = vmul.f32 %v304_v8, %v766_v29  ;;  %v881_v8 = vperm.slane %v588_v61, 1 }
 0x2a0   :  { %v319_v9 = vpop.permute.xlu1 %318  ;;  %v301_v11 = vpop.xlane.xlu0 %300 }
 0x2a1   :  { %v324_v10 = vsel %vm21_vm0, %v319_v9, 0.0  ;;  %v305_v40 = vmul.f32 %v301_v11, %v766_v29 }
 0x2a2   :  { %325 = vadd.xlane.f32.xlu2 %v324_v10  ;;  %v609_v10 = vld [vmem:[%s964_s2] ss:$0 sm:$0xff] }
 0x2b3   :  { %v337_v16 = vpop.permute.xlu0 %336 }
 0x2ba   :  { %120 = vrot.lane.b32.xlu2 %v116_v25, %s612_s0 }
 0x2bb   :  { %v362_v26 = vpop.permute.xlu0 %361 }
 0x2bc   :  { %v364_v28 = vmul.f32 %v362_v26, %v649_v0  ;;  %v365_v30 = vmul.f32 %v362_v26, %v659_v6 }
 0x2be   :  { %370 = vrot.lane.b32.xlu1 %v365_v30, %s621_s23  ;;  %368 = vrot.lane.b32.xlu0 %v364_v28, %s621_s23 }
 0x2c2   :  { %122 = vrot.lane.b32.xlu2 %v117_v17, %s612_s0 }
 0x2c6   :  { %386 = vrot.lane.b32.xlu1 %v816_v22, %s620_s22  ;;  %195 = vrot.lane.b32.xlu0 %v191_v32, %s616_s4 }
 0x2ca   :  { %270 = vrot.lane.b32.xlu2 %v266_v43, %s615_s30 }
 0x2ce   :  { %197 = vrot.lane.b32.xlu0 %v192_v37, %s616_s4 }
 0x2d6   :  { %272 = vrot.lane.b32.xlu0 %v267_v39, %s615_s30 }
 0x2ed   :  { %v329_v41 = vpop.xlane.xlu1 %328 }
 0x2ee   :  { %v331_v23 = vmul.f32 %v329_v41, %v782_v51 }
 0x2f0   :  { %v333_v44 = vadd.f32 %v331_v23, %v306_v42 }
 0x2f2   :  { %v340_v45 = vadd.f32 %v337_v16, %v333_v44 }
 0x2f4   :  { %v342_v48 = vmax.f32 %v340_v45, 0.0 }
 0x2f6   :  { %347 = vrot.lane.b32.xlu2 %v342_v48, %s618_s16 }
 0x315   :  { %v326_v19 = vpop.xlane.xlu2 %325 }
 0x316   :  { %v330_v46 = vmul.f32 %v326_v19, %v782_v51 }
 0x318   :  { %v332_v47 = vadd.f32 %v330_v46, %v305_v40 }
 0x31a   :  { %v339_v49 = vadd.f32 %v337_v16, %v332_v47 }
 0x31c   :  { %v341_v50 = vmax.f32 %v339_v49, 0.0 }
 0x31d   :  { %v121_v52 = vpop.permute.xlu2 %120 }
 0x31e   :  { %127 = vst.msk [vmem:[%s965_s3] sm:$0xff] %vm126_vm1, %v121_v52  ;;  %345 = vrot.lane.b32.xlu0 %v341_v50, %s618_s16 }
 0x325   :  { %v123_v53 = vpop.permute.xlu2 %122 }
 0x326   :  { %128 = vst.msk [vmem:[%s965_s3 + $0x8] sm:$0xff] %vm126_vm1, %v123_v53 }
 0x32d   :  { %v271_v57 = vpop.permute.xlu2 %270 }
 0x330   :  { %v371_v54 = vpop.permute.xlu1 %370  ;;  %v369_v29 = vpop.permute.xlu0 %368 }
 0x331   :  { %v377_v51 = vsel %vm21_vm0, %v371_v54, 0.0  ;;  %v374_v62 = vsel %vm21_vm0, %v369_v29, 0.0 }
 0x332   :  { %378 = vadd.xlane.f32.xlu2 %v377_v51 }
 0x338   :  { %v387_v55 = vpop.permute.xlu1 %386  ;;  %v196_v56 = vpop.permute.xlu0 %195 }
 0x339   :  { %v389_v58 = vmul.f32 %v387_v55, %v649_v0  ;;  %202 = vst.msk [vmem:[%s965_s3] sm:$0xff] %vm201_vm2, %v196_v56  ;;  %v390_v60 = vmul.f32 %v387_v55, %v659_v6 }
 0x33a   :  { %277 = vst.msk [vmem:[%s965_s3] sm:$0xff] %vm276_vm3, %v271_v57  ;;  %v610_v57 = vld [vmem:[%s964_s2] ss:$0 sm:$0xff] }
 0x33b   :  { %393 = vrot.lane.b32.xlu1 %v389_v58, %s621_s23  ;;  %v611_v58 = vld [vmem:[%s964_s2] ss:$0 sm:$0xff] }
 0x340   :  { %v198_v59 = vpop.permute.xlu0 %197 }
 0x341   :  { %203 = vst.msk [vmem:[%s965_s3 + $0x8] sm:$0xff] %vm201_vm2, %v198_v59 }
 0x343   :  { %395 = vrot.lane.b32.xlu1 %v390_v60, %s621_s23 }
 0x348   :  { %375 = vadd.xlane.f32.xlu0 %v374_v62  ;;  %v273_v2 = vpop.permute.xlu0 %272 }
 0x349   :  { %278 = vst.msk [vmem:[%s965_s3 + $0x8] sm:$0xff] %vm276_vm3, %v273_v2 }
 0x34a   :  { %461 = vrot.lane.b32.xlu2 %v881_v8, %s622_s10 }
 0x34b   :  { %436 = vrot.lane.b32.xlu1 %v859_v1, %s622_s10 }
 0x350   :  { %v348_v5 = vpop.permute.xlu2 %347 }
 0x351   :  { %353 = vst.msk [vmem:[%s965_s3 + $0x8] sm:$0xff] %vm351_vm4, %v348_v5 }
 0x352   :  { %411 = vrot.lane.b32.xlu2 %v609_v10, %s621_s23 }
 0x353   :  { %536 = vrot.lane.b32.xlu1 %v870_v4, %s623_s15 }
 0x35c   :  { %511 = vrot.lane.b32.xlu0 %v877_v7, %s623_s15 }
 0x390   :  { %v346_v9 = vpop.permute.xlu0 %345 }
 0x391   :  { %352 = vst.msk [vmem:[%s965_s3] sm:$0xff] %vm351_vm4, %v346_v9 }
 0x3a5   :  { %v379_v16 = vpop.xlane.xlu2 %378 }
 0x3a6   :  { %v381_v35 = vmul.f32 %v379_v16, %v796_v63 }
 0x3ad   :  { %v394_v11 = vpop.permute.xlu1 %393  ;;  %v462_v20 = vpop.permute.xlu2 %461 }
 0x3ae   :  { %v399_v12 = vsel %vm21_vm0, %v394_v11, 0.0  ;;  %v464_v24 = vmul.f32 %v462_v20, %v649_v0  ;;  %v465_v25 = vmul.f32 %v462_v20, %v659_v6 }
 0x3af   :  { %400 = vadd.xlane.f32.xlu1 %v399_v12 }
 0x3b5   :  { %v396_v13 = vpop.permute.xlu1 %395  ;;  %v412_v31 = vpop.permute.xlu2 %411 }
 0x3b6   :  { %v402_v15 = vsel %vm21_vm0, %v396_v13, 0.0 }
 0x3b7   :  { %403 = vadd.xlane.f32.xlu0 %v402_v15 }
 0x3bb   :  { %v376_v28 = vpop.xlane.xlu0 %375 }
 0x3bc   :  { %v380_v17 = vmul.f32 %v376_v28, %v796_v63 }
 0x3bd   :  { %v437_v18 = vpop.permute.xlu1 %436 }
 0x3be   :  { %v439_v41 = vmul.f32 %v437_v18, %v649_v0  ;;  %v440_v42 = vmul.f32 %v437_v18, %v659_v6 }
 0x3c5   :  { %v537_v26 = vpop.permute.xlu1 %536 }
 0x3c6   :  { %v540_v27 = vmul.f32 %v537_v26, %v659_v6 }
 0x3c8   :  { %468 = vrot.lane.b32.xlu1 %v464_v24, %s624_s19 }
 0x3cb   :  { %470 = vrot.lane.b32.xlu0 %v465_v25, %s624_s19 }
 0x3ce   :  { %v512_v30 = vpop.permute.xlu0 %511 }
 0x3cf   :  { %v514_v23 = vmul.f32 %v512_v30, %v649_v0  ;;  %v515_v63 = vmul.f32 %v512_v30, %v659_v6 }
 0x3d3   :  { %545 = vrot.lane.b32.xlu0 %v540_v27, %s625_s20 }
 0x422   :  { %v401_v14 = vpop.xlane.xlu1 %400 }
 0x423   :  { %v405_v21 = vmul.f32 %v401_v14, %v816_v22 }
 0x425   :  { %v407_v32 = vadd.f32 %v405_v21, %v380_v17 }
 0x427   :  { %v414_v43 = vadd.f32 %v412_v31, %v407_v32 }
 0x429   :  { %v416_v33 = vmax.f32 %v414_v43, 0.0 }
 0x42a   :  { %v404_v34 = vpop.xlane.xlu0 %403 }
 0x42b   :  { %v406_v36 = vmul.f32 %v404_v34, %v816_v22  ;;  %420 = vrot.lane.b32.xlu2 %v416_v33, %s620_s22  ;;  %v539_v22 = vmul.f32 %v537_v26, %v649_v0 }
 0x42d   :  { %v408_v37 = vadd.f32 %v406_v36, %v381_v35 }
 0x42f   :  { %v415_v38 = vadd.f32 %v412_v31, %v408_v37 }
 0x431   :  { %v417_v39 = vmax.f32 %v415_v38, 0.0 }
 0x433   :  { %422 = vrot.lane.b32.xlu2 %v417_v39, %s620_s22 }
 0x43a   :  { %v469_v44 = vpop.permute.xlu1 %468 }
 0x43b   :  { %443 = vrot.lane.b32.xlu2 %v439_v41, %s624_s19  ;;  %v474_v45 = vsel %vm21_vm0, %v469_v44, 0.0 }
 0x43c   :  { %475 = vadd.xlane.f32.xlu0 %v474_v45 }
 0x43d   :  { %v471_v40 = vpop.permute.xlu0 %470 }
 0x43e   :  { %v477_v49 = vsel %vm21_vm0, %v471_v40, 0.0 }
 0x443   :  { %445 = vrot.lane.b32.xlu2 %v440_v42, %s624_s19 }
 0x445   :  { %v546_v53 = vpop.permute.xlu0 %545 }
 0x446   :  { %v552_v51 = vsel %vm21_vm0, %v546_v53, 0.0 }
 0x44b   :  { %518 = vrot.lane.b32.xlu2 %v514_v23, %s625_s20 }
 0x453   :  { %520 = vrot.lane.b32.xlu2 %v515_v63, %s625_s20 }
 0x45b   :  { %543 = vrot.lane.b32.xlu2 %v539_v22, %s625_s20 }
 0x485   :  { %v421_v48 = vpop.permute.xlu2 %420 }
 0x486   :  { %427 = vst.msk [vmem:[%s965_s3] sm:$0xff] %vm426_vm5, %v421_v48 }
 0x48d   :  { %v423_v19 = vpop.permute.xlu2 %422 }
 0x48e   :  { %428 = vst.msk [vmem:[%s965_s3 + $0x8] sm:$0xff] %vm426_vm5, %v423_v19 }
 0x495   :  { %v444_v6 = vpop.permute.xlu2 %443 }
 0x496   :  { %v449_v0 = vsel %vm21_vm0, %v444_v6, 0.0 }
 0x497   :  { %450 = vadd.xlane.f32.xlu1 %v449_v0 }
 0x49d   :  { %v446_v46 = vpop.permute.xlu2 %445 }
 0x49e   :  { %v452_v47 = vsel %vm21_vm0, %v446_v46, 0.0 }
 0x49f   :  { %453 = vadd.xlane.f32.xlu2 %v452_v47  ;;  %478 = vadd.xlane.f32.xlu1 %v477_v49 }
 0x4a5   :  { %v519_v50 = vpop.permute.xlu2 %518 }
 0x4a6   :  { %v524_v52 = vsel %vm21_vm0, %v519_v50, 0.0 }
 0x4a7   :  { %525 = vadd.xlane.f32.xlu2 %v524_v52 }
 0x4ad   :  { %v521_v54 = vpop.permute.xlu2 %520 }
 0x4ae   :  { %v527_v29 = vsel %vm21_vm0, %v521_v54, 0.0 }
 0x4af   :  { %528 = vadd.xlane.f32.xlu0 %v527_v29  ;;  %553 = vadd.xlane.f32.xlu2 %v552_v51  ;;  %v476_v60 = vpop.xlane.xlu0 %475 }
 0x4b0   :  { %v480_v11 = vmul.f32 %v476_v60, %v881_v8 }
 0x4b5   :  { %v544_v55 = vpop.permute.xlu2 %543 }
 0x4b6   :  { %v549_v56 = vsel %vm21_vm0, %v544_v55, 0.0 }
 0x4b7   :  { %550 = vadd.xlane.f32.xlu1 %v549_v56 }
 0x4c3   :  { %486 = vrot.lane.b32.xlu0 %v610_v57, %s624_s19 }
 0x4d0   :  { %561 = vrot.lane.b32.xlu1 %v611_v58, %s625_s20 }
 0x50a   :  { %v451_v59 = vpop.xlane.xlu1 %450 }
 0x50b   :  { %v455_v3 = vmul.f32 %v451_v59, %v859_v1 }
 0x50d   :  { %v482_v12 = vadd.f32 %v480_v11, %v455_v3 }
 0x512   :  { %v454_v61 = vpop.xlane.xlu2 %453  ;;  %v479_v62 = vpop.xlane.xlu1 %478 }
 0x513   :  { %v456_v5 = vmul.f32 %v454_v61, %v859_v1  ;;  %v481_v9 = vmul.f32 %v479_v62, %v881_v8 }
 0x515   :  { %v483_v13 = vadd.f32 %v481_v9, %v456_v5 }
 0x51a   :  { %v526_v10 = vpop.xlane.xlu2 %525 }
 0x51b   :  { %v530_v8 = vmul.f32 %v526_v10, %v877_v7 }
 0x522   :  { %v529_v2 = vpop.xlane.xlu0 %528  ;;  %v554_v25 = vpop.xlane.xlu2 %553 }
 0x523   :  { %v556_v1 = vmul.f32 %v554_v25, %v870_v4  ;;  %v531_v27 = vmul.f32 %v529_v2, %v877_v7 }
 0x525   :  { %v558_v30 = vadd.f32 %v556_v1, %v531_v27 }
 0x52a   :  { %v551_v26 = vpop.xlane.xlu1 %550 }
 0x52b   :  { %v555_v28 = vmul.f32 %v551_v26, %v870_v4 }
 0x52d   :  { %v557_v14 = vadd.f32 %v555_v28, %v530_v8 }
 0x535   :  { %v487_v15 = vpop.permute.xlu0 %486 }
 0x536   :  { %v489_v16 = vadd.f32 %v487_v15, %v482_v12  ;;  %v490_v18 = vadd.f32 %v487_v15, %v483_v13 }
 0x538   :  { %v491_v20 = vmax.f32 %v489_v16, 0.0  ;;  %v492_v24 = vmax.f32 %v490_v18, 0.0 }
 0x53a   :  { %497 = vrot.lane.b32.xlu0 %v492_v24, %s622_s10  ;;  %495 = vrot.lane.b32.xlu2 %v491_v20, %s622_s10 }
 0x542   :  { %v562_v17 = vpop.permute.xlu1 %561 }
 0x543   :  { %v564_v21 = vadd.f32 %v562_v17, %v557_v14  ;;  %v565_v31 = vadd.f32 %v562_v17, %v558_v30 }
 0x545   :  { %v566_v32 = vmax.f32 %v564_v21, 0.0  ;;  %v567_v43 = vmax.f32 %v565_v31, 0.0 }
 0x547   :  { %570 = vrot.lane.b32.xlu1 %v566_v32, %s623_s15  ;;  %572 = vrot.lane.b32.xlu0 %v567_v43, %s623_s15 }
 0x594   :  { %v496_v33 = vpop.permute.xlu2 %495 }
 0x595   :  { %502 = vst.msk [vmem:[%s965_s3] sm:$0xff] %vm501_vm6, %v496_v33 }
 0x5ac   :  { %v498_v4 = vpop.permute.xlu0 %497 }
 0x5ad   :  { %503 = vst.msk [vmem:[%s965_s3 + $0x8] sm:$0xff] %vm501_vm6, %v498_v4 }
 0x5b9   :  { %v571_v7 = vpop.permute.xlu1 %570  ;;  %v573_v34 = vpop.permute.xlu0 %572 }
 0x5ba   :  { %577 = vst.msk [vmem:[%s965_s3] sm:$0xff] %vm576_vm7, %v571_v7 }
 0x5bb   :  { %578 = vst.msk [vmem:[%s965_s3 + $0x8] sm:$0xff] %vm576_vm7, %v573_v34 }

</bundles_post_ra>
